<compile_context>
chip_gen: v5e
topology: v5e:2x2
jax: 0.10.0
libtpu: 0.0.40
codegen_flags: <defaults>
</compile_context>

<pallas_src>
import functools

import jax
import jax.numpy as jnp
from jax.experimental import pallas as pl
from jax.experimental.pallas import tpu as pltpu


def _round_up(x, m):
    return ((x + m - 1) // m) * m


def _policy_ce_kernel(logits_ref, target_ref, out_ref, *,
                      num_classes, batch, tile_rows, label_smoothing):
    """Per-row label-smoothed cross-entropy, summed over the rows of this tile."""
    x = logits_ref[...].astype(jnp.float32)                       # (TB, C) f32 math
    tb, c = x.shape

    m = jnp.max(x, axis=-1, keepdims=True)                        # (TB, 1)
    sum_exp = jnp.sum(jnp.exp(x - m), axis=-1, keepdims=True)     # (TB, 1)
    lse = m + jnp.log(sum_exp)                                    # full logsumexp
    sum_x = jnp.sum(x, axis=-1, keepdims=True)                    # (TB, 1)

    # target clamp: policy_target.clamp(0, C-1); pick x[row, tgt[row]] via lane compare.
    tgt = jnp.clip(target_ref[...].astype(jnp.int32), 0, num_classes - 1)   # (TB, 1)
    lane = jax.lax.broadcasted_iota(jnp.int32, (tb, c), 1)
    picked = jnp.sum(jnp.where(lane == tgt, x, 0.0), axis=-1, keepdims=True)

    nll = lse - picked                                            # -log p[target]
    smooth = lse - sum_x / num_classes                            # -mean_c log p
    per = (1.0 - label_smoothing) * nll + label_smoothing * smooth  # (TB, 1)

    # Mask rows past the true batch.  Only emitted when the last grid tile is
    # partial; the overhanging rows hold stale VMEM data, so any NaN/Inf they
    # produce is dropped here (jnp.where selects, it does not propagate).
    if batch % tile_rows != 0:
        row = jax.lax.broadcasted_iota(jnp.int32, (tb, 1), 0)
        global_row = pl.program_id(0) * tile_rows + row
        per = jnp.where(global_row < batch, per, 0.0)

    # Lane-dense per-tile partial sum (wrapper reads lane 0); a plain broadcast
    # store, no iota/select epilogue.
    out_ref[...] = jnp.full((1, 1, 128), jnp.sum(per), dtype=jnp.float32)


def improved_multitask_loss(policy_logits, policy_target, value_pred, value_target,
                            policy_weight=1.0, value_weight=1.0, label_smoothing=0.1,
                            tile_rows=None):
    """Equivalent of ImprovedMultiTaskLoss.forward. Returns a scalar float32."""
    B, C = policy_logits.shape
    c_lane = _round_up(C, 128)         # physical lane width of a (TB, C) VMEM tile

    # --- batch tile size ---------------------------------------------------
    # Per-row working set: double-buffered logits tile + ~4 logits-sized f32/i32
    # temporaries (x-m, exp, lane iota, select) + lane-padded int32 targets.
    per_row = c_lane * 4 * 6 + 128 * 4 * 2
    budget = 36 * (1 << 20)            # v7x-safe (64 MiB physical VMEM per TC)
    if tile_rows is None:
        TB = 1024
        while TB > 8 and TB * per_row > budget:
            TB //= 2
    else:
        TB = int(tile_rows)            # must be a multiple of 8
    if B <= TB:
        TB = B                         # one full-extent block (also handles B % 8 != 0)
    num_tiles = (B + TB - 1) // TB

    vmem_limit = int(min(48 * (1 << 20),
                         max(16 * (1 << 20), TB * per_row + (1 << 20))))

    # Targets are tiny: reshape/cast is O(B) and keeps the (TB, 1) block simple.
    tgt2d = policy_target.reshape(-1).astype(jnp.int32).reshape(B, 1)

    kernel = functools.partial(
        _policy_ce_kernel,
        num_classes=int(C),
        batch=int(B),
        tile_rows=int(TB),
        label_smoothing=float(label_smoothing),
    )

    partials = pl.pallas_call(
        kernel,
        grid=(num_tiles,),
        in_specs=[
            # Full class dim in the block: no wrapper pad/cast copy of the logits.
            pl.BlockSpec((TB, C), lambda i: (i, 0)),
            pl.BlockSpec((TB, 1), lambda i: (i, 0)),
        ],
        out_specs=pl.BlockSpec((1, 1, 128), lambda i: (i, 0, 0)),
        out_shape=jax.ShapeDtypeStruct((num_tiles, 1, 128), jnp.float32),
        compiler_params=pltpu.CompilerParams(
            dimension_semantics=("parallel",),   # shard batch tiles across v7x cores
            vmem_limit_bytes=vmem_limit,
        ),
    )(policy_logits, tgt2d)

    loss_p = jnp.sum(partials[:, 0, 0]) / B

    # Value MSE is O(B): plain JAX (removes two tiny per-step DMAs from the kernel).
    vp = value_pred.reshape(-1).astype(jnp.float32)
    vt = value_target.reshape(-1).astype(jnp.float32)
    loss_v = jnp.mean((vp - vt) ** 2)

    return (policy_weight * loss_p + value_weight * loss_v).astype(jnp.float32)


def _reference_loss(policy_logits, policy_target, value_pred, value_target,
                    policy_weight=1.0, value_weight=1.0, label_smoothing=0.1):
    """Pure-JAX reference mirroring torch semantics."""
    B, C = policy_logits.shape
    tgt = jnp.clip(policy_target.astype(jnp.int32), 0, C - 1)
    logp = jax.nn.log_softmax(policy_logits.astype(jnp.float32), axis=-1)
    nll = -jnp.take_along_axis(logp, tgt[:, None], axis=-1)[:, 0]
    smooth = -jnp.mean(logp, axis=-1)
    loss_p = jnp.mean((1.0 - label_smoothing) * nll + label_smoothing * smooth)
    loss_v = jnp.mean((value_pred.reshape(-1) - value_target.reshape(-1)) ** 2)
    return policy_weight * loss_p + value_weight * loss_v


if __name__ == "__main__":
    pw, vw, ls = 1.0, 1.5, 0.1

    # Case 1: small shapes exercising a single full-extent block (B=12 rows,
    # C=130 classes not a multiple of 128) and the out-of-range target clamp.
    k1, k2, k3, k4 = jax.random.split(jax.random.PRNGKey(0), 4)
    B, C = 12, 130
    policy_logits = jax.random.normal(k1, (B, C), dtype=jnp.float32)
    policy_target = jax.random.randint(k2, (B,), -2, C + 2, dtype=jnp.int32)
    value_pred = jax.random.normal(k3, (B, 1), dtype=jnp.float32)
    value_target = jax.random.uniform(k4, (B,), minval=-1.0, maxval=1.0,
                                      dtype=jnp.float32)

    loss = improved_multitask_loss(policy_logits, policy_target, value_pred,
                                   value_target, policy_weight=pw, value_weight=vw,
                                   label_smoothing=ls)
    loss = jax.block_until_ready(loss)
    ref = _reference_loss(policy_logits, policy_target, value_pred, value_target,
                          pw, vw, ls)
    assert jnp.allclose(loss, ref, rtol=1e-5, atol=1e-5), (loss, ref)

    # Case 2: force small tiles so the grid has several steps and the last tile
    # is partial (B=200 with TB=64 -> tiles of 64/64/64/8, overhang masked).
    k5, k6, k7, k8 = jax.random.split(jax.random.PRNGKey(1), 4)
    B2, C2 = 200, 130
    plog2 = jax.random.normal(k5, (B2, C2), dtype=jnp.float32)
    ptgt2 = jax.random.randint(k6, (B2,), -2, C2 + 2, dtype=jnp.int32)
    vpred2 = jax.random.normal(k7, (B2, 1), dtype=jnp.float32)
    vtgt2 = jax.random.uniform(k8, (B2,), minval=-1.0, maxval=1.0, dtype=jnp.float32)

    loss2 = improved_multitask_loss(plog2, ptgt2, vpred2, vtgt2, policy_weight=pw,
                                    value_weight=vw, label_smoothing=ls,
                                    tile_rows=64)
    loss2 = jax.block_until_ready(loss2)
    ref2 = _reference_loss(plog2, ptgt2, vpred2, vtgt2, pw, vw, ls)
    assert jnp.allclose(loss2, ref2, rtol=1e-5, atol=1e-5), (loss2, ref2)

    print("KERNEL_OK")
</pallas_src>

<mosaic_0001>
module attributes {stable_mosaic.version = 11 : i64} {
  func.func @_policy_ce_kernel(%arg0: i32, %arg1: memref<12x130xf32, #tpu.memory_space<vmem>>, %arg2: memref<12x1xi32, #tpu.memory_space<vmem>>, %arg3: memref<1x1x128xf32, #tpu.memory_space<vmem>>) attributes {dimension_semantics = [#tpu.dimension_semantics<parallel>], iteration_bounds = array<i64: 1>, scalar_prefetch = 0 : i64, scratch_operands = 0 : i64, tpu.core_type = #tpu.core_type<tc>, window_params = [{transform_indices = @transform_0, window_bounds = array<i64: 12, 130>}, {transform_indices = @transform_1, window_bounds = array<i64: 12, 1>}, {transform_indices = @transform_2, window_bounds = array<i64: 1, 1, 128>}]} {
    %c0 = arith.constant 0 : index
    %c0_0 = arith.constant 0 : index
    %0 = vector.load %arg1[%c0, %c0_0] : memref<12x130xf32, #tpu.memory_space<vmem>>, vector<12x130xf32>
    %cst = arith.constant dense<0xFF800000> : vector<12xf32>
    %1 = vector.multi_reduction <maximumf>, %0, %cst [1] : vector<12x130xf32> to vector<12xf32>
    %2 = vector.shape_cast %1 : vector<12xf32> to vector<12x1xf32>
    %3 = vector.broadcast %2 : vector<12x1xf32> to vector<12x130xf32>
    %4 = arith.subf %0, %3 : vector<12x130xf32>
    %5 = math.exp %4 : vector<12x130xf32>
    %cst_1 = arith.constant dense<0.000000e+00> : vector<12xf32>
    %6 = vector.multi_reduction <add>, %5, %cst_1 [1] : vector<12x130xf32> to vector<12xf32>
    %7 = vector.shape_cast %6 : vector<12xf32> to vector<12x1xf32>
    %8 = math.log %7 : vector<12x1xf32>
    %9 = arith.addf %2, %8 : vector<12x1xf32>
    %cst_2 = arith.constant dense<0.000000e+00> : vector<12xf32>
    %10 = vector.multi_reduction <add>, %0, %cst_2 [1] : vector<12x130xf32> to vector<12xf32>
    %11 = vector.shape_cast %10 : vector<12xf32> to vector<12x1xf32>
    %c0_3 = arith.constant 0 : index
    %c0_4 = arith.constant 0 : index
    %12 = vector.load %arg2[%c0_3, %c0_4] : memref<12x1xi32, #tpu.memory_space<vmem>>, vector<12x1xi32>
    %c0_i32 = arith.constant 0 : i32
    %c129_i32 = arith.constant 129 : i32
    %13 = vector.broadcast %c0_i32 : i32 to vector<12x1xi32>
    %14 = arith.maxsi %13, %12 : vector<12x1xi32>
    %15 = vector.broadcast %c129_i32 : i32 to vector<12x1xi32>
    %16 = arith.minsi %15, %14 : vector<12x1xi32>
    %17 = tpu.iota {dimensions = array<i32: 1>} : vector<12x130xi32>
    %18 = vector.broadcast %16 : vector<12x1xi32> to vector<12x130xi32>
    %19 = arith.cmpi eq, %17, %18 : vector<12x130xi32>
    %cst_5 = arith.constant 0.000000e+00 : f32
    %20 = vector.broadcast %cst_5 : f32 to vector<12x130xf32>
    %21 = arith.select %19, %0, %20 : vector<12x130xi1>, vector<12x130xf32>
    %cst_6 = arith.constant dense<0.000000e+00> : vector<12xf32>
    %22 = vector.multi_reduction <add>, %21, %cst_6 [1] : vector<12x130xf32> to vector<12xf32>
    %23 = vector.shape_cast %22 : vector<12xf32> to vector<12x1xf32>
    %24 = arith.subf %9, %23 : vector<12x1xf32>
    %cst_7 = arith.constant 1.300000e+02 : f32
    %25 = vector.broadcast %cst_7 : f32 to vector<12x1xf32>
    %26 = arith.divf %11, %25 : vector<12x1xf32>
    %27 = arith.subf %9, %26 : vector<12x1xf32>
    %cst_8 = arith.constant 0.899999976 : f32
    %28 = vector.broadcast %cst_8 : f32 to vector<12x1xf32>
    %29 = arith.mulf %28, %24 : vector<12x1xf32>
    %cst_9 = arith.constant 1.000000e-01 : f32
    %30 = vector.broadcast %cst_9 : f32 to vector<12x1xf32>
    %31 = arith.mulf %30, %27 : vector<12x1xf32>
    %32 = arith.addf %29, %31 : vector<12x1xf32>
    %33 = vector.shape_cast %32 : vector<12x1xf32> to vector<1x12x1xf32>
    %cst_10 = arith.constant dense<0.000000e+00> : vector<1xf32>
    %34 = vector.multi_reduction <add>, %33, %cst_10 [1, 2] : vector<1x12x1xf32> to vector<1xf32>
    %35 = vector.shape_cast %34 : vector<1xf32> to vector<1x1x1xf32>
    %36 = vector.extract %35[0, 0, 0] : f32 from vector<1x1x1xf32>
    %37 = vector.broadcast %36 : f32 to vector<1x1x128xf32>
    %c0_11 = arith.constant 0 : index
    %c0_12 = arith.constant 0 : index
    %c0_13 = arith.constant 0 : index
    %38 = vector.load %arg3[%c0_11, %c0_12, %c0_13] : memref<1x1x128xf32, #tpu.memory_space<vmem>>, vector<1x1x128xf32>
    tpu.vector_store %arg3[%c0_11, %c0_12, %c0_13], %37 {strides = array<i32>} : memref<1x1x128xf32, #tpu.memory_space<vmem>>, vector<1x1x128xf32>,
    return
  }
  func.func @transform_0(%arg0: i32) -> (i32, i32) {
    %c0_i32 = arith.constant 0 : i32
    %c0_i32_0 = arith.constant 0 : i32
    return %arg0, %c0_i32 : i32, i32
  }
  func.func @transform_1(%arg0: i32) -> (i32, i32) {
    %c0_i32 = arith.constant 0 : i32
    %c0_i32_0 = arith.constant 0 : i32
    return %arg0, %c0_i32 : i32, i32
  }
  func.func @transform_2(%arg0: i32) -> (i32, i32, i32) {
    %c0_i32 = arith.constant 0 : i32
    %c0_i32_0 = arith.constant 0 : i32
    %c0_i32_1 = arith.constant 0 : i32
    return %arg0, %c0_i32, %c0_i32_0 : i32, i32, i32
  }
}

</mosaic_0001>

<bundles_post_ra>
// kernel: tpu_custom_call.1
= control target key start
LH: loop header
LB: loop body
LE: loop exit
PB: predicated region body
PF: predicated region fallthrough
CT: control target
= control target key end

     0   :  { %7 = vsyncpa [#allocation3], 0  ;;  %s301_s0 = inlined_call_operand.hbm [shape: f32[12,130], index: 0, kind: input, shape index: {}]   ;;  %s302_s1 = inlined_call_operand.vmem [shape: s32[12,1], index: 1, kind: input, shape index: {}]   ;;  %s303_s2 = inlined_call_operand.hbm [shape: f32[1,1,128], index: 2, kind: output, shape index: {}]  }
   0x1   :  { %8 = vsyncpa [#allocation4], 0  ;;  %s13_s11 = sshll.u32 %s301_s0, 4  ;;  %s244_s12 = smov [#allocation2]   ;;  %s14_s11 = int_to_ptr.hbm [resolvable:$true] %s13_s11 }
   0x2   :  { %s15_s13 = sshll.u32 %s244_s12, 4  ;;  %s245_s14 = smov 256   ;;  %s16_s13 = int_to_ptr.vmem [resolvable:$true] %s15_s13 }
   0x3   :  { %s246_s15 = smov 16  }
   0x4   :  { %21 = dma.hbm_to_vmem [thread:$0]  %s14_s11, 512, %s16_s13, [#allocation3], %s245_s14, %s245_s14, %s246_s15  }
   0x5   :  { %240 = dma.done.wait [#allocation3], 512  }
   0x6   :  { %241 = vsyncadd [#allocation3], 4294966784  ;;  %v247_v0 = vmov 0   ;;  %vm32_vm0 = vcmask 15360   ;;  %v268_v1 = vld [vmem:[#allocation2] sm:$0xff]  ;;  %v270_v2 = vld [vmem:[#allocation2 + $0x8] sm:$0xff]  ;;  %v90_v18 = vlaneseq }
   0x7   :  { %176 = vset.pattern.permute.xlu1 %v247_v0  ;;  %177 = vset.pattern.permute.xlu0 %v247_v0  ;;  %v33_v3 = vsel %vm32_vm0, %v270_v2, -inf  ;;  %v30_v4 = vld [vmem:[#allocation2 + $0x10] sm:$0xf]  ;;  %vm37_vm1 = vcmask 1043456   ;;  %v80_v5 = vld [vmem:[%s302_s1] sm:$0xff]  ;;  %vm39_vm2 = vcmask 11264  }
   0x8   :  { %v34_v6 = vmax.f32 %v268_v1, %v33_v3  ;;  %v31_v7 = vld [vmem:[#allocation2 + $0x18] sm:$0xf]  ;;  %vm82_vm3 = vcmp.gt.s32.totalorder %v80_v5, 0  ;;  %v81_v8 = vld [vmem:[%s302_s1 + $0x8] sm:$0xf]  ;;  %v38_v10 = vsel %vm37_vm1, %v30_v4, -inf }
   0x9   :  { %v83_v9 = vsel %vm82_vm3, %v80_v5, 0  ;;  %vm84_vm4 = vcmp.gt.s32.totalorder %v81_v8, 0  ;;  %v40_v11 = vsel %vm39_vm2, %v31_v7, -inf  ;;  %v71_v16 = vsel %vm32_vm0, %v270_v2, 0.0  ;;  %s249_s1 = smov [#allocation5]   ;;  %s158_s22 = sshll.u32 %s303_s2, 4  ;;  %s159_s22 = int_to_ptr.hbm [resolvable:$true] %s158_s22 }
   0xa   :  { %35 = vmax.xlane.f32.xlu0 %v34_v6  ;;  %vm86_vm5 = vcmp.lt.s32.totalorder %v83_v9, 129  ;;  %v85_v13 = vsel %vm84_vm4, %v81_v8, 0  ;;  %v41_v14 = vmax.f32 %v38_v10, %v40_v11  ;;  %v72_v17 = vadd.f32 %v71_v16, %v268_v1  ;;  %s156_s19 = sshll.u32 %s249_s1, 4  ;;  %s157_s19 = int_to_ptr.vmem [resolvable:$true] %s156_s19 }
   0xb   :  { %v87_v12 = vsel %vm86_vm5, %v83_v9, 129  ;;  %vm88_vm6 = vcmp.lt.s32.totalorder %v85_v13, 129  ;;  %v75_v19 = vsel %vm37_vm1, %v30_v4, 0.0  ;;  %v76_v20 = vsel %vm39_vm2, %v31_v7, 0.0 }
   0xc   :  { %94 = vperm.xlu1 %176, %v87_v12   ;;  %v89_v15 = vsel %vm88_vm6, %v85_v13, 129  ;;  %v77_v21 = vadd.f32 %v76_v20, %v75_v19  ;;  %v91_v26 = vand.u32 127, %v90_v18  ;;  %v248_v54 = vmov 130.0  }
   0xd   :  { %vm135_vm12 = vcmask 7168   ;;  %vm137_vm13 = vcmask 3072  }
   0xe   :  { %v92_v29 = vadd.s32 128, %v91_v26 }
  0x12   :  { %42 = vmax.xlane.f32.xlu0 %v41_v14 }
  0x14   :  { %97 = vperm.xlu1 %176, %v89_v15  }
  0x1a   :  { %73 = vadd.xlane.f32.xlu0 %v72_v17 }
  0x3e   :  { %78 = vadd.xlane.f32.xlu1 %v77_v21 }
  0x7d   :  { %v36_v22 = vpop.xlane.xlu0 %35 }
  0x7e   :  { %v44_v23 = vsub.f32 %v268_v1, %v36_v22  ;;  %v45_v24 = vsub.f32 %v270_v2, %v36_v22  ;;  %v95_v25 = vpop.permute.xlu1 %94 }
  0x7f   :  { %vm100_vm9 = vcmp.eq.s32.totalorder %v92_v29, %v95_v25  ;;  %vm99_vm10 = vcmp.eq.s32.totalorder %v91_v26, %v95_v25 }
  0x80   :  { %v48_v27 = vmul.f32 1.442695, %v44_v23  ;;  %v50_v28 = vmul.f32 1.442695, %v45_v24  ;;  %v104_v50 = vsel %vm100_vm9, %v270_v2, 0.0  ;;  %v103_v51 = vsel %vm99_vm10, %v268_v1, 0.0 }
  0x81   :  { %v107_v52 = vsel %vm32_vm0, %v104_v50, 0.0 }
  0x82   :  { %178 = vpow2.f32 %v48_v27  ;;  %v108_v53 = vadd.f32 %v107_v52, %v103_v51 }
  0x83   :  { %180 = vpow2.f32 %v50_v28 }
  0x85   :  { %v43_v30 = vpop.xlane.xlu0 %42 }
  0x86   :  { %v46_v31 = vsub.f32 %v30_v4, %v43_v30  ;;  %v47_v32 = vsub.f32 %v31_v7, %v43_v30  ;;  %v98_v33 = vpop.permute.xlu1 %97 }
  0x87   :  { %vm101_vm7 = vcmp.eq.s32.totalorder %v91_v26, %v98_v33  ;;  %vm102_vm8 = vcmp.eq.s32.totalorder %v92_v29, %v98_v33 }
  0x88   :  { %v179_v34 = vpop.eup %178  ;;  %v52_v35 = vmul.f32 1.442695, %v46_v31  ;;  %v54_v36 = vmul.f32 1.442695, %v47_v32  ;;  %v105_v37 = vsel %vm101_vm7, %v30_v4, 0.0  ;;  %v106_v38 = vsel %vm102_vm8, %v31_v7, 0.0 }
  0x89   :  { %v181_v39 = vpop.eup %180  ;;  %v111_v40 = vsel %vm37_vm1, %v105_v37, 0.0  ;;  %v112_v41 = vsel %vm39_vm2, %v106_v38, 0.0 }
  0x8a   :  { %182 = vpow2.f32 %v52_v35  ;;  %v56_v42 = vsel %vm32_vm0, %v181_v39, 0.0  ;;  %v113_v43 = vadd.f32 %v112_v41, %v111_v40 }
  0x8b   :  { %184 = vpow2.f32 %v54_v36  ;;  %v57_v44 = vadd.f32 %v179_v34, %v56_v42 }
  0x8c   :  { %114 = vadd.xlane.f32.xlu0 %v113_v43  ;;  %186 = vrcp.f32 %v248_v54 }
  0x8d   :  { %58 = vadd.xlane.f32.xlu2 %v57_v44  ;;  %v74_v2 = vpop.xlane.xlu0 %73 }
  0x90   :  { %v183_v45 = vpop.eup %182 }
  0x91   :  { %v185_v46 = vpop.eup %184  ;;  %v60_v47 = vsel %vm37_vm1, %v183_v45, 0.0 }
  0x92   :  { %v61_v48 = vsel %vm39_vm2, %v185_v46, 0.0  ;;  %v187_v55 = vpop.eup %186 }
  0x93   :  { %v62_v49 = vadd.f32 %v61_v48, %v60_v47  ;;  %v119_v56 = vmul.f32 130.0, %v187_v55  ;;  %vm123_vm11 = vweird.f32 %v187_v55 }
  0x95   :  { %63 = vadd.xlane.f32.xlu2 %v62_v49  ;;  %v120_v57 = vsub.f32 1.0, %v119_v56 }
  0x97   :  { %v121_v59 = vmul.f32 %v187_v55, %v120_v57 }
  0x99   :  { %v122_v60 = vadd.f32 %v187_v55, %v121_v59 }
  0x9b   :  { %v124_v0 = vsel %vm123_vm11, %v187_v55, %v122_v60 }
  0x9c   :  { %v125_v3 = vmul.f32 %v124_v0, %v74_v2 }
  0x9d   :  { %109 = vadd.xlane.f32.xlu2 %v108_v53 }
  0xb1   :  { %v79_v4 = vpop.xlane.xlu1 %78 }
  0xb2   :  { %v126_v9 = vmul.f32 %v124_v0, %v79_v4 }
  0xff   :  { %v115_v12 = vpop.xlane.xlu0 %114 }
 0x100   :  { %v59_v58 = vpop.xlane.xlu2 %58 }
 0x101   :  { %188 = vlog2.f32 %v59_v58 }
 0x107   :  { %v189_v61 = vpop.eup %188 }
 0x108   :  { %v66_v62 = vmul.f32 0.6931472, %v189_v61  ;;  %v64_v63 = vpop.xlane.xlu2 %63 }
 0x109   :  { %190 = vlog2.f32 %v64_v63 }
 0x10a   :  { %v69_v1 = vadd.f32 %v66_v62, %v36_v22 }
 0x10c   :  { %v127_v6 = vsub.f32 %v69_v1, %v125_v3 }
 0x10e   :  { %v131_v14 = vmul.f32 0.1, %v127_v6 }
 0x10f   :  { %v191_v5 = vpop.eup %190 }
 0x110   :  { %v68_v7 = vmul.f32 0.6931472, %v191_v5  ;;  %v110_v8 = vpop.xlane.xlu2 %109 }
 0x111   :  { %v116_v10 = vsub.f32 %v69_v1, %v110_v8 }
 0x112   :  { %v70_v11 = vadd.f32 %v68_v7, %v43_v30 }
 0x113   :  { %v129_v13 = vmul.f32 0.9, %v116_v10 }
 0x114   :  { %v117_v15 = vsub.f32 %v70_v11, %v115_v12  ;;  %v128_v16 = vsub.f32 %v70_v11, %v126_v9 }
 0x115   :  { %v133_v18 = vadd.f32 %v131_v14, %v129_v13 }
 0x116   :  { %v130_v17 = vmul.f32 0.9, %v117_v15  ;;  %v132_v19 = vmul.f32 0.1, %v128_v16 }
 0x117   :  { %v136_v21 = vsel %vm135_vm12, %v133_v18, 0.0 }
 0x118   :  { %v134_v20 = vadd.f32 %v132_v19, %v130_v17 }
 0x11a   :  { %v138_v22 = vsel %vm137_vm13, %v134_v20, 0.0 }
 0x11b   :  { %v139_v23 = vadd.f32 %v138_v22, %v136_v21 }
 0x11d   :  { %140 = vadd.xlane.f32.xlu2 %v139_v23 }
 0x190   :  { %v141_v24 = vpop.xlane.xlu2 %140 }
 0x191   :  { %v142_v25 = vrot.slane %v141_v24, 4 }
 0x193   :  { %v143_v26 = vadd.f32 %v142_v25, %v141_v24 }
 0x195   :  { %v144_v27 = vrot.slane %v143_v26, 2 }
 0x197   :  { %v145_v28 = vadd.f32 %v144_v27, %v143_v26 }
 0x199   :  { %v146_v29 = vrot.slane %v145_v28, 1 }
 0x19b   :  { %v147_v30 = vadd.f32 %v146_v29, %v145_v28 }
 0x19d   :  { %168 = vpush %v147_v30 }
 0x1ce   :  { %s169_s23 = spop %168 }
 0x1cf   :  { %v149_v31 = vstv %s169_s23 }
 0x1d0   :  { %150 = vst [vmem:[#allocation5] sm:$0x1] %v149_v31 }
 0x1d1   :  { %161 = dma.vmem_to_hbm [thread:$0]  %s157_s19, 16, %s159_s22, [#allocation4]  }
 0x1d2   :  { %242 = dma.done.wait [#allocation4], 16  }
 0x1d3   :  { %243 = vsyncadd [#allocation4], 4294967280 }
 0x1d4   :  { %166 = vsyncpa [#allocation3], 1 }
 0x1d5   :  { %167 = vsyncpa [#allocation4], 1 }

</bundles_post_ra>
